<compile_context>
chip_gen: v5e
topology: v5e:2x2
jax: 0.10.0
libtpu: 0.0.40
codegen_flags: <defaults>
</compile_context>

<pallas_src>
import jax
import jax.numpy as jnp
from jax.experimental import pallas as pl
from jax.experimental.pallas import tpu as pltpu

LANE = 128
SUB = 16  # bf16 sublane packing -> batch tile is a multiple of 16


# ----------------------------- kernel body ---------------------------------
def _swish_f32(z):
    # swish(z) = z * sigmoid(z), sigmoid(z) = 0.5*(tanh(z/2)+1).
    # One EUP transcendental per element + cheap VALU ops; stable for large |z|.
    # All elementwise math stays f32 (no bf16 VPU/EUP on v5e).
    return z * (0.5 * jnp.tanh(0.5 * z) + 0.5)


def head_kernel(feat_ref, meta_ref,
                w1_ref, t1_ref,
                w2_ref, t2_ref,
                wf1a_ref, wf1b_ref, t3_ref,
                wf2_ref, t4_ref,
                out_ref):
    """Fused meta-MLP + concat + myfc head for one batch tile.

    Linear bias + eval-mode BatchNorm1d are pre-folded host-side:
        BN(x @ W + b) == x @ (W * scale) + shift
    so each stage is matmul -> add shift -> swish.  Matmul operands are cast
    to bf16 in-kernel; accumulation and activations are f32.
    """
    cdt = w1_ref.dtype  # compute (matmul-operand) dtype, bf16

    # ---- meta branch (tiny K; weights VMEM-resident) ----------------------
    h = jnp.dot(meta_ref[...].astype(cdt), w1_ref[...],
                preferred_element_type=jnp.float32)
    h = _swish_f32(h + t1_ref[...])                 # Linear->BN->Swish
    # Dropout(p=0.3) is identity in eval mode.
    h = jnp.dot(h.astype(cdt), w2_ref[...], preferred_element_type=jnp.float32)
    h = _swish_f32(h + t2_ref[...])                 # Linear->BN->Swish

    # ---- concat(feat, h) @ Wf1 == feat @ Wf1a + h @ Wf1b ------------------
    y = (jnp.dot(feat_ref[...].astype(cdt), wf1a_ref[...],
                 preferred_element_type=jnp.float32)
         + jnp.dot(h.astype(cdt), wf1b_ref[...],
                   preferred_element_type=jnp.float32))
    y = _swish_f32(y + t3_ref[...])                 # Linear->BN->Swish
    # Dropout(p=0.3) is identity in eval mode.
    y = jnp.dot(y.astype(cdt), wf2_ref[...], preferred_element_type=jnp.float32)
    y = _swish_f32(y + t4_ref[...])                 # Linear->BN->Swish

    # 5 x Dropout(0.5) passes averaged == identity in eval mode.
    out_ref[...] = y                                 # lane-dense (TB, d1p) store


# ----------------------------- host helpers ---------------------------------
def _fold(w, bias, gamma, beta, mean, var, eps=1e-5):
    """Fold Linear bias + eval BatchNorm1d into (scaled weight, shift)."""
    scale = gamma / jnp.sqrt(var + eps)
    shift = (bias - mean) * scale + beta
    return w * scale[None, :], shift[None, :]


def _round_up(x, m):
    return ((x + m - 1) // m) * m


def _vmem_capacity_bytes():
    try:
        return int(pltpu.get_tpu_info().vmem_capacity_bytes)
    except Exception:
        return 64 << 20   # conservative fallback: v7x per-TensorCore VMEM


def _pick_batch_tile(B, in_ch, n_meta, d0, d1p, resident_bytes, vmem_budget):
    """Largest MXU-friendly batch tile that fits the data-buffer VMEM budget."""
    # Per-row VMEM cost: f32 feat/meta/out tiles double-buffered by the
    # pipeline, plus f32 intermediates (h, pre-activation y, y) in the body.
    per_row = (in_ch * 4 * 2 + n_meta * 4 * 2 + d1p * 4 * 2
               + (d0 + 2 * d1p) * 4)
    avail = max(vmem_budget - resident_bytes, SUB * per_row)
    tb = int(avail // per_row)
    tb = min(512, max(SUB, (tb // SUB) * SUB))       # cap at MXU-saturating M
    tb = min(tb, _round_up(B, SUB))                  # don't pad far past B
    if B >= 4 * SUB:
        # Keep >= 4 grid steps: megacore sharding + DMA/compute overlap.
        tb = min(tb, _round_up(pl.cdiv(B, 4), SUB))
    return max(tb, SUB)


def resnest_mmc_head(feat, x_meta, params, *,
                     batch_tile=None, compute_dtype=jnp.bfloat16):
    B, in_ch = feat.shape
    n_meta = x_meta.shape[1]
    d0 = params["w1"].shape[1]          # n_meta_dim[0] (== out_dim)
    d1 = params["wf2"].shape[1]         # n_meta_dim[1]

    # ---- host-side BN/bias folding (f32) ----------------------------------
    w1, t1 = _fold(params["w1"], params["b1"], params["g1"], params["be1"],
                   params["m1"], params["v1"])
    w2, t2 = _fold(params["w2"], params["b2"], params["g2"], params["be2"],
                   params["m2"], params["v2"])
    wf1, t3 = _fold(params["wf1"], params["bf1"], params["gf1"], params["bef1"],
                    params["mf1"], params["vf1"])
    wf2, t4 = _fold(params["wf2"], params["bf2"], params["gf2"], params["bef2"],
                    params["mf2"], params["vf2"])

    wf1a = wf1[:in_ch, :]      # acts on backbone features
    wf1b = wf1[in_ch:, :]      # acts on meta features

    # ---- lane-dense output: pad d1 -> multiple of 128 lanes only if needed --
    d1p = d1 if d1 % LANE == 0 else _round_up(d1, LANE)
    if d1p != d1:
        wf2 = jnp.pad(wf2, ((0, 0), (0, d1p - d1)))
        t4 = jnp.pad(t4, ((0, 0), (0, d1p - d1)))

    # ---- bf16 matmul weights (resident); shifts stay f32 -------------------
    # feat / x_meta are passed as f32 and cast *inside* the kernel (avoids a
    # separate XLA convert pass over the dominant HBM stream).
    w1_c = w1.astype(compute_dtype)
    w2_c = w2.astype(compute_dtype)
    wf1a_c = wf1a.astype(compute_dtype)
    wf1b_c = wf1b.astype(compute_dtype)
    wf2_c = wf2.astype(compute_dtype)

    resident_arrays = (w1_c, t1, w2_c, t2, wf1a_c, wf1b_c, t3, wf2_c, t4)
    resident_bytes = int(sum(a.size * a.dtype.itemsize for a in resident_arrays))

    # ---- batch tile from per-generation VMEM budget -------------------------
    vmem_cap = _vmem_capacity_bytes()
    if batch_tile is None:
        TB = _pick_batch_tile(B, in_ch, n_meta, d0, d1p,
                              2 * resident_bytes,        # worst case dbl-buffered
                              int(0.45 * vmem_cap))
    else:
        TB = max(SUB, _round_up(int(batch_tile), SUB))

    Bp = _round_up(B, TB)
    feat_p = jnp.pad(feat, ((0, Bp - B), (0, 0))) if Bp != B else feat
    meta_p = jnp.pad(x_meta, ((0, Bp - B), (0, 0))) if Bp != B else x_meta
    grid = (Bp // TB,)

    # ---- explicit scoped-VMEM limit (default 16/32 MiB would cap the tiles) --
    tile_bytes = TB * (in_ch + n_meta + d1p) * 4 * 2          # double-buffered
    body_bytes = TB * (d0 + 2 * d1p) * 4                      # f32 intermediates
    needed = 2 * resident_bytes + tile_bytes + body_bytes
    vmem_limit = int(min(max(2 * needed, 32 << 20), int(0.9 * vmem_cap)))

    # ---- advisory cost estimate for XLA scheduling --------------------------
    flops = 2 * Bp * (n_meta * d0 + d0 * d1 + (in_ch + d1) * d0 + d0 * d1)
    trans = Bp * 2 * (d0 + d1)                                 # one tanh / swish elem
    bytes_acc = (Bp * (in_ch + n_meta) * 4 + resident_bytes + Bp * d1p * 4)
    cost = pl.CostEstimate(flops=int(flops), transcendentals=int(trans),
                           bytes_accessed=int(bytes_acc))

    args = (feat_p, meta_p) + resident_arrays

    def build(single_buffer_resident):
        def tile_spec(d):
            return pl.BlockSpec((TB, d), lambda b: (b, 0))

        def resident_spec(arr):
            # Constant index_map -> DMA'd once, VMEM-resident for the whole grid.
            if single_buffer_resident:
                # Single buffer halves the resident-weight footprint (v7x 64 MiB).
                return pl.BlockSpec(arr.shape, lambda b: (0, 0),
                                    pipeline_mode=pl.Buffered(1))
            return pl.BlockSpec(arr.shape, lambda b: (0, 0))

        in_specs = ([tile_spec(in_ch), tile_spec(n_meta)]
                    + [resident_spec(a) for a in resident_arrays])

        return pl.pallas_call(
            head_kernel,
            out_shape=jax.ShapeDtypeStruct((Bp, d1p), jnp.float32),
            grid=grid,
            in_specs=in_specs,
            out_specs=tile_spec(d1p),
            compiler_params=pltpu.CompilerParams(
                dimension_semantics=("parallel",),   # batch tiles across TCs (v7x)
                vmem_limit_bytes=vmem_limit),
            cost_estimate=cost,
        )

    try:
        out = jax.block_until_ready(build(True)(*args))
    except Exception:
        # pipeline_mode=pl.Buffered(1) unsupported on this jax version/backend:
        # fall back to default (double-buffered) resident weights.
        out = jax.block_until_ready(build(False)(*args))

    return out[:B, :d1]


# --------------------------- plain-JAX reference ---------------------------
def _reference(feat, x_meta, params):
    def bn(x, g, b, m, v, eps=1e-5):
        return (x - m) / jnp.sqrt(v + eps) * g + b

    def swish(z):
        return z * jax.nn.sigmoid(z)

    h = x_meta @ params["w1"] + params["b1"]
    h = swish(bn(h, params["g1"], params["be1"], params["m1"], params["v1"]))
    h = h @ params["w2"] + params["b2"]
    h = swish(bn(h, params["g2"], params["be2"], params["m2"], params["v2"]))
    x = jnp.concatenate([feat, h], axis=1)

    def myfc(x):
        y = x @ params["wf1"] + params["bf1"]
        y = swish(bn(y, params["gf1"], params["bef1"], params["mf1"], params["vf1"]))
        y = y @ params["wf2"] + params["bf2"]
        y = swish(bn(y, params["gf2"], params["bef2"], params["mf2"], params["vf2"]))
        return y

    return sum(myfc(x) for _ in range(5)) / 5.0   # dropout == identity in eval


def _make_params(key, in_ch, n_meta, d0, d1, out_dim):
    assert out_dim == d0, "original module requires out_dim == n_meta_dim[0]"
    ks = jax.random.split(key, 8)

    def lin(k, fan_in, fan_out):
        kw, kb = jax.random.split(k)
        w = jax.random.normal(kw, (fan_in, fan_out), jnp.float32) * 0.05
        b = jax.random.normal(kb, (fan_out,), jnp.float32) * 0.02
        return w, b

    def bn(k, d):
        kg, kb, km, kv = jax.random.split(k, 4)
        g = 1.0 + 0.1 * jax.random.normal(kg, (d,), jnp.float32)
        b = 0.1 * jax.random.normal(kb, (d,), jnp.float32)
        m = 0.1 * jax.random.normal(km, (d,), jnp.float32)
        v = 1.0 + 0.1 * jnp.abs(jax.random.normal(kv, (d,), jnp.float32))
        return g, b, m, v

    p = {}
    p["w1"], p["b1"] = lin(ks[0], n_meta, d0)
    p["g1"], p["be1"], p["m1"], p["v1"] = bn(ks[1], d0)
    p["w2"], p["b2"] = lin(ks[2], d0, d1)
    p["g2"], p["be2"], p["m2"], p["v2"] = bn(ks[3], d1)
    p["wf1"], p["bf1"] = lin(ks[4], in_ch + d1, out_dim)
    p["gf1"], p["bef1"], p["mf1"], p["vf1"] = bn(ks[5], d0)
    p["wf2"], p["bf2"] = lin(ks[6], d0, d1)
    p["gf2"], p["bef2"], p["mf2"], p["vf2"] = bn(ks[7], d1)
    return p


if __name__ == "__main__":
    B = 128               # auto-picked TB=32 -> 4 grid steps (exercise pipeline)
    in_ch = 64            # stand-in for resnest101's 2048 fc.in_features
    n_meta_features = 8
    n_meta_dim = [32, 16]
    out_dim = 32          # must equal n_meta_dim[0] for the original code to run

    key = jax.random.PRNGKey(0)
    kf, km, kp = jax.random.split(key, 3)
    feat = jax.random.normal(kf, (B, in_ch), jnp.float32)     # enet(x) output
    x_meta = jax.random.normal(km, (B, n_meta_features), jnp.float32)
    params = _make_params(kp, in_ch, n_meta_features,
                          n_meta_dim[0], n_meta_dim[1], out_dim)

    out = resnest_mmc_head(feat, x_meta, params)
    out = jax.block_until_ready(out)

    ref = _reference(feat, x_meta, params)
    assert out.shape == (B, n_meta_dim[1]), out.shape
    # bf16 matmul operands + bf16 intermediate rounding -> loosened tolerance.
    assert jnp.allclose(out, ref, atol=2e-2, rtol=2e-2), (
        "mismatch vs reference: max abs diff "
        f"{float(jnp.max(jnp.abs(out - ref)))}")

    print("KERNEL_OK")
</pallas_src>

<mosaic_0001>
module attributes {stable_mosaic.version = 11 : i64} {
  func.func @head_kernel(%arg0: i32, %arg1: memref<32x64xf32, #tpu.memory_space<vmem>>, %arg2: memref<32x8xf32, #tpu.memory_space<vmem>>, %arg3: memref<8x32xbf16, #tpu.memory_space<vmem>>, %arg4: memref<1x32xf32, #tpu.memory_space<vmem>>, %arg5: memref<32x16xbf16, #tpu.memory_space<vmem>>, %arg6: memref<1x16xf32, #tpu.memory_space<vmem>>, %arg7: memref<64x32xbf16, #tpu.memory_space<vmem>>, %arg8: memref<16x32xbf16, #tpu.memory_space<vmem>>, %arg9: memref<1x32xf32, #tpu.memory_space<vmem>>, %arg10: memref<32x128xbf16, #tpu.memory_space<vmem>>, %arg11: memref<1x128xf32, #tpu.memory_space<vmem>>, %arg12: memref<32x128xf32, #tpu.memory_space<vmem>>) attributes {dimension_semantics = [#tpu.dimension_semantics<parallel>], iteration_bounds = array<i64: 4>, scalar_prefetch = 0 : i64, scratch_operands = 0 : i64, tpu.core_type = #tpu.core_type<tc>, window_params = [{transform_indices = @transform_0, window_bounds = array<i64: 32, 64>}, {transform_indices = @transform_1, window_bounds = array<i64: 32, 8>}, {pipeline_mode = #tpu.pipeline_mode<synchronous>, transform_indices = @transform_2, window_bounds = array<i64: 8, 32>}, {pipeline_mode = #tpu.pipeline_mode<synchronous>, transform_indices = @transform_3, window_bounds = array<i64: 1, 32>}, {pipeline_mode = #tpu.pipeline_mode<synchronous>, transform_indices = @transform_4, window_bounds = array<i64: 32, 16>}, {pipeline_mode = #tpu.pipeline_mode<synchronous>, transform_indices = @transform_5, window_bounds = array<i64: 1, 16>}, {pipeline_mode = #tpu.pipeline_mode<synchronous>, transform_indices = @transform_6, window_bounds = array<i64: 64, 32>}, {pipeline_mode = #tpu.pipeline_mode<synchronous>, transform_indices = @transform_7, window_bounds = array<i64: 16, 32>}, {pipeline_mode = #tpu.pipeline_mode<synchronous>, transform_indices = @transform_8, window_bounds = array<i64: 1, 32>}, {pipeline_mode = #tpu.pipeline_mode<synchronous>, transform_indices = @transform_9, window_bounds = array<i64: 32, 128>}, {pipeline_mode = #tpu.pipeline_mode<synchronous>, transform_indices = @transform_10, window_bounds = array<i64: 1, 128>}, {transform_indices = @transform_11, window_bounds = array<i64: 32, 128>}]} {
    %c0 = arith.constant 0 : index
    %c0_0 = arith.constant 0 : index
    %0 = vector.load %arg2[%c0, %c0_0] : memref<32x8xf32, #tpu.memory_space<vmem>>, vector<32x8xf32>
    %1 = arith.truncf %0 : vector<32x8xf32> to vector<32x8xbf16>
    %c0_1 = arith.constant 0 : index
    %c0_2 = arith.constant 0 : index
    %2 = vector.load %arg3[%c0_1, %c0_2] : memref<8x32xbf16, #tpu.memory_space<vmem>>, vector<8x32xbf16>
    %cst = arith.constant dense<0.000000e+00> : vector<32x32xf32>
    %3 = tpu.matmul %1, %2, %cst {dimension_numbers = #tpu.dot_dimension_numbers<[1], [0], [0], [1], [0, 0, 1, 1], [], []>} : vector<32x8xbf16>, vector<8x32xbf16>, vector<32x32xf32> -> vector<32x32xf32>
    %c0_3 = arith.constant 0 : index
    %c0_4 = arith.constant 0 : index
    %4 = vector.load %arg4[%c0_3, %c0_4] : memref<1x32xf32, #tpu.memory_space<vmem>>, vector<1x32xf32>
    %5 = vector.broadcast %4 : vector<1x32xf32> to vector<32x32xf32>
    %6 = arith.addf %3, %5 : vector<32x32xf32>
    %cst_5 = arith.constant 5.000000e-01 : f32
    %7 = vector.broadcast %cst_5 : f32 to vector<32x32xf32>
    %8 = arith.mulf %7, %6 : vector<32x32xf32>
    %9 = math.tanh %8 : vector<32x32xf32>
    %cst_6 = arith.constant 5.000000e-01 : f32
    %10 = vector.broadcast %cst_6 : f32 to vector<32x32xf32>
    %11 = arith.mulf %10, %9 : vector<32x32xf32>
    %cst_7 = arith.constant 5.000000e-01 : f32
    %12 = vector.broadcast %cst_7 : f32 to vector<32x32xf32>
    %13 = arith.addf %11, %12 : vector<32x32xf32>
    %14 = arith.mulf %6, %13 : vector<32x32xf32>
    %15 = arith.truncf %14 : vector<32x32xf32> to vector<32x32xbf16>
    %c0_8 = arith.constant 0 : index
    %c0_9 = arith.constant 0 : index
    %16 = vector.load %arg5[%c0_8, %c0_9] : memref<32x16xbf16, #tpu.memory_space<vmem>>, vector<32x16xbf16>
    %cst_10 = arith.constant dense<0.000000e+00> : vector<32x16xf32>
    %17 = tpu.matmul %15, %16, %cst_10 {dimension_numbers = #tpu.dot_dimension_numbers<[1], [0], [0], [1], [0, 0, 1, 1], [], []>} : vector<32x32xbf16>, vector<32x16xbf16>, vector<32x16xf32> -> vector<32x16xf32>
    %c0_11 = arith.constant 0 : index
    %c0_12 = arith.constant 0 : index
    %18 = vector.load %arg6[%c0_11, %c0_12] : memref<1x16xf32, #tpu.memory_space<vmem>>, vector<1x16xf32>
    %19 = vector.broadcast %18 : vector<1x16xf32> to vector<32x16xf32>
    %20 = arith.addf %17, %19 : vector<32x16xf32>
    %cst_13 = arith.constant 5.000000e-01 : f32
    %21 = vector.broadcast %cst_13 : f32 to vector<32x16xf32>
    %22 = arith.mulf %21, %20 : vector<32x16xf32>
    %23 = math.tanh %22 : vector<32x16xf32>
    %cst_14 = arith.constant 5.000000e-01 : f32
    %24 = vector.broadcast %cst_14 : f32 to vector<32x16xf32>
    %25 = arith.mulf %24, %23 : vector<32x16xf32>
    %cst_15 = arith.constant 5.000000e-01 : f32
    %26 = vector.broadcast %cst_15 : f32 to vector<32x16xf32>
    %27 = arith.addf %25, %26 : vector<32x16xf32>
    %28 = arith.mulf %20, %27 : vector<32x16xf32>
    %c0_16 = arith.constant 0 : index
    %c0_17 = arith.constant 0 : index
    %29 = vector.load %arg1[%c0_16, %c0_17] : memref<32x64xf32, #tpu.memory_space<vmem>>, vector<32x64xf32>
    %30 = arith.truncf %29 : vector<32x64xf32> to vector<32x64xbf16>
    %c0_18 = arith.constant 0 : index
    %c0_19 = arith.constant 0 : index
    %31 = vector.load %arg7[%c0_18, %c0_19] : memref<64x32xbf16, #tpu.memory_space<vmem>>, vector<64x32xbf16>
    %cst_20 = arith.constant dense<0.000000e+00> : vector<32x32xf32>
    %32 = tpu.matmul %30, %31, %cst_20 {dimension_numbers = #tpu.dot_dimension_numbers<[1], [0], [0], [1], [0, 0, 1, 1], [], []>} : vector<32x64xbf16>, vector<64x32xbf16>, vector<32x32xf32> -> vector<32x32xf32>
    %33 = arith.truncf %28 : vector<32x16xf32> to vector<32x16xbf16>
    %c0_21 = arith.constant 0 : index
    %c0_22 = arith.constant 0 : index
    %34 = vector.load %arg8[%c0_21, %c0_22] : memref<16x32xbf16, #tpu.memory_space<vmem>>, vector<16x32xbf16>
    %cst_23 = arith.constant dense<0.000000e+00> : vector<32x32xf32>
    %35 = tpu.matmul %33, %34, %cst_23 {dimension_numbers = #tpu.dot_dimension_numbers<[1], [0], [0], [1], [0, 0, 1, 1], [], []>} : vector<32x16xbf16>, vector<16x32xbf16>, vector<32x32xf32> -> vector<32x32xf32>
    %36 = arith.addf %32, %35 : vector<32x32xf32>
    %c0_24 = arith.constant 0 : index
    %c0_25 = arith.constant 0 : index
    %37 = vector.load %arg9[%c0_24, %c0_25] : memref<1x32xf32, #tpu.memory_space<vmem>>, vector<1x32xf32>
    %38 = vector.broadcast %37 : vector<1x32xf32> to vector<32x32xf32>
    %39 = arith.addf %36, %38 : vector<32x32xf32>
    %cst_26 = arith.constant 5.000000e-01 : f32
    %40 = vector.broadcast %cst_26 : f32 to vector<32x32xf32>
    %41 = arith.mulf %40, %39 : vector<32x32xf32>
    %42 = math.tanh %41 : vector<32x32xf32>
    %cst_27 = arith.constant 5.000000e-01 : f32
    %43 = vector.broadcast %cst_27 : f32 to vector<32x32xf32>
    %44 = arith.mulf %43, %42 : vector<32x32xf32>
    %cst_28 = arith.constant 5.000000e-01 : f32
    %45 = vector.broadcast %cst_28 : f32 to vector<32x32xf32>
    %46 = arith.addf %44, %45 : vector<32x32xf32>
    %47 = arith.mulf %39, %46 : vector<32x32xf32>
    %48 = arith.truncf %47 : vector<32x32xf32> to vector<32x32xbf16>
    %c0_29 = arith.constant 0 : index
    %c0_30 = arith.constant 0 : index
    %49 = vector.load %arg10[%c0_29, %c0_30] : memref<32x128xbf16, #tpu.memory_space<vmem>>, vector<32x128xbf16>
    %cst_31 = arith.constant dense<0.000000e+00> : vector<32x128xf32>
    %50 = tpu.matmul %48, %49, %cst_31 {dimension_numbers = #tpu.dot_dimension_numbers<[1], [0], [0], [1], [0, 0, 1, 1], [], []>} : vector<32x32xbf16>, vector<32x128xbf16>, vector<32x128xf32> -> vector<32x128xf32>
    %c0_32 = arith.constant 0 : index
    %c0_33 = arith.constant 0 : index
    %51 = vector.load %arg11[%c0_32, %c0_33] : memref<1x128xf32, #tpu.memory_space<vmem>>, vector<1x128xf32>
    %52 = vector.broadcast %51 : vector<1x128xf32> to vector<32x128xf32>
    %53 = arith.addf %50, %52 : vector<32x128xf32>
    %cst_34 = arith.constant 5.000000e-01 : f32
    %54 = vector.broadcast %cst_34 : f32 to vector<32x128xf32>
    %55 = arith.mulf %54, %53 : vector<32x128xf32>
    %56 = math.tanh %55 : vector<32x128xf32>
    %cst_35 = arith.constant 5.000000e-01 : f32
    %57 = vector.broadcast %cst_35 : f32 to vector<32x128xf32>
    %58 = arith.mulf %57, %56 : vector<32x128xf32>
    %cst_36 = arith.constant 5.000000e-01 : f32
    %59 = vector.broadcast %cst_36 : f32 to vector<32x128xf32>
    %60 = arith.addf %58, %59 : vector<32x128xf32>
    %61 = arith.mulf %53, %60 : vector<32x128xf32>
    %c0_37 = arith.constant 0 : index
    %c0_38 = arith.constant 0 : index
    %62 = vector.load %arg12[%c0_37, %c0_38] : memref<32x128xf32, #tpu.memory_space<vmem>>, vector<32x128xf32>
    tpu.vector_store %arg12[%c0_37, %c0_38], %61 {strides = array<i32>} : memref<32x128xf32, #tpu.memory_space<vmem>>, vector<32x128xf32>,
    return
  }
  func.func @transform_0(%arg0: i32) -> (i32, i32) {
    %c0_i32 = arith.constant 0 : i32
    %c0_i32_0 = arith.constant 0 : i32
    return %arg0, %c0_i32 : i32, i32
  }
  func.func @transform_1(%arg0: i32) -> (i32, i32) {
    %c0_i32 = arith.constant 0 : i32
    %c0_i32_0 = arith.constant 0 : i32
    return %arg0, %c0_i32 : i32, i32
  }
  func.func @transform_2(%arg0: i32) -> (i32, i32) {
    %c0_i32 = arith.constant 0 : i32
    %c0_i32_0 = arith.constant 0 : i32
    %c0_i32_1 = arith.constant 0 : i32
    return %c0_i32, %c0_i32_0 : i32, i32
  }
  func.func @transform_3(%arg0: i32) -> (i32, i32) {
    %c0_i32 = arith.constant 0 : i32
    %c0_i32_0 = arith.constant 0 : i32
    %c0_i32_1 = arith.constant 0 : i32
    return %c0_i32, %c0_i32_0 : i32, i32
  }
  func.func @transform_4(%arg0: i32) -> (i32, i32) {
    %c0_i32 = arith.constant 0 : i32
    %c0_i32_0 = arith.constant 0 : i32
    %c0_i32_1 = arith.constant 0 : i32
    return %c0_i32, %c0_i32_0 : i32, i32
  }
  func.func @transform_5(%arg0: i32) -> (i32, i32) {
    %c0_i32 = arith.constant 0 : i32
    %c0_i32_0 = arith.constant 0 : i32
    %c0_i32_1 = arith.constant 0 : i32
    return %c0_i32, %c0_i32_0 : i32, i32
  }
  func.func @transform_6(%arg0: i32) -> (i32, i32) {
    %c0_i32 = arith.constant 0 : i32
    %c0_i32_0 = arith.constant 0 : i32
    %c0_i32_1 = arith.constant 0 : i32
    return %c0_i32, %c0_i32_0 : i32, i32
  }
  func.func @transform_7(%arg0: i32) -> (i32, i32) {
    %c0_i32 = arith.constant 0 : i32
    %c0_i32_0 = arith.constant 0 : i32
    %c0_i32_1 = arith.constant 0 : i32
    return %c0_i32, %c0_i32_0 : i32, i32
  }
  func.func @transform_8(%arg0: i32) -> (i32, i32) {
    %c0_i32 = arith.constant 0 : i32
    %c0_i32_0 = arith.constant 0 : i32
    %c0_i32_1 = arith.constant 0 : i32
    return %c0_i32, %c0_i32_0 : i32, i32
  }
  func.func @transform_9(%arg0: i32) -> (i32, i32) {
    %c0_i32 = arith.constant 0 : i32
    %c0_i32_0 = arith.constant 0 : i32
    %c0_i32_1 = arith.constant 0 : i32
    return %c0_i32, %c0_i32_0 : i32, i32
  }
  func.func @transform_10(%arg0: i32) -> (i32, i32) {
    %c0_i32 = arith.constant 0 : i32
    %c0_i32_0 = arith.constant 0 : i32
    %c0_i32_1 = arith.constant 0 : i32
    return %c0_i32, %c0_i32_0 : i32, i32
  }
  func.func @transform_11(%arg0: i32) -> (i32, i32) {
    %c0_i32 = arith.constant 0 : i32
    %c0_i32_0 = arith.constant 0 : i32
    return %arg0, %c0_i32 : i32, i32
  }
}

module attributes {stable_mosaic.version = 11 : i64} {
  func.func @head_kernel(%arg0: i32, %arg1: memref<32x64xf32, #tpu.memory_space<vmem>>, %arg2: memref<32x8xf32, #tpu.memory_space<vmem>>, %arg3: memref<8x32xbf16, #tpu.memory_space<vmem>>, %arg4: memref<1x32xf32, #tpu.memory_space<vmem>>, %arg5: memref<32x16xbf16, #tpu.memory_space<vmem>>, %arg6: memref<1x16xf32, #tpu.memory_space<vmem>>, %arg7: memref<64x32xbf16, #tpu.memory_space<vmem>>, %arg8: memref<16x32xbf16, #tpu.memory_space<vmem>>, %arg9: memref<1x32xf32, #tpu.memory_space<vmem>>, %arg10: memref<32x128xbf16, #tpu.memory_space<vmem>>, %arg11: memref<1x128xf32, #tpu.memory_space<vmem>>, %arg12: memref<32x128xf32, #tpu.memory_space<vmem>>) attributes {dimension_semantics = [#tpu.dimension_semantics<parallel>], iteration_bounds = array<i64: 4>, scalar_prefetch = 0 : i64, scratch_operands = 0 : i64, tpu.core_type = #tpu.core_type<tc>, window_params = [{transform_indices = @transform_0, window_bounds = array<i64: 32, 64>}, {transform_indices = @transform_1, window_bounds = array<i64: 32, 8>}, {pipeline_mode = #tpu.pipeline_mode<synchronous>, transform_indices = @transform_2, window_bounds = array<i64: 8, 32>}, {pipeline_mode = #tpu.pipeline_mode<synchronous>, transform_indices = @transform_3, window_bounds = array<i64: 1, 32>}, {pipeline_mode = #tpu.pipeline_mode<synchronous>, transform_indices = @transform_4, window_bounds = array<i64: 32, 16>}, {pipeline_mode = #tpu.pipeline_mode<synchronous>, transform_indices = @transform_5, window_bounds = array<i64: 1, 16>}, {pipeline_mode = #tpu.pipeline_mode<synchronous>, transform_indices = @transform_6, window_bounds = array<i64: 64, 32>}, {pipeline_mode = #tpu.pipeline_mode<synchronous>, transform_indices = @transform_7, window_bounds = array<i64: 16, 32>}, {pipeline_mode = #tpu.pipeline_mode<synchronous>, transform_indices = @transform_8, window_bounds = array<i64: 1, 32>}, {pipeline_mode = #tpu.pipeline_mode<synchronous>, transform_indices = @transform_9, window_bounds = array<i64: 32, 128>}, {pipeline_mode = #tpu.pipeline_mode<synchronous>, transform_indices = @transform_10, window_bounds = array<i64: 1, 128>}, {transform_indices = @transform_11, window_bounds = array<i64: 32, 128>}]} {
    %c0 = arith.constant 0 : index
    %c0_0 = arith.constant 0 : index
    %0 = vector.load %arg2[%c0, %c0_0] : memref<32x8xf32, #tpu.memory_space<vmem>>, vector<32x8xf32>
    %1 = arith.truncf %0 : vector<32x8xf32> to vector<32x8xbf16>
    %c0_1 = arith.constant 0 : index
    %c0_2 = arith.constant 0 : index
    %2 = vector.load %arg3[%c0_1, %c0_2] : memref<8x32xbf16, #tpu.memory_space<vmem>>, vector<8x32xbf16>
    %cst = arith.constant dense<0.000000e+00> : vector<32x32xf32>
    %3 = tpu.matmul %1, %2, %cst {dimension_numbers = #tpu.dot_dimension_numbers<[1], [0], [0], [1], [0, 0, 1, 1], [], []>} : vector<32x8xbf16>, vector<8x32xbf16>, vector<32x32xf32> -> vector<32x32xf32>
    %c0_3 = arith.constant 0 : index
    %c0_4 = arith.constant 0 : index
    %4 = vector.load %arg4[%c0_3, %c0_4] : memref<1x32xf32, #tpu.memory_space<vmem>>, vector<1x32xf32>
    %5 = vector.broadcast %4 : vector<1x32xf32> to vector<32x32xf32>
    %6 = arith.addf %3, %5 : vector<32x32xf32>
    %cst_5 = arith.constant 5.000000e-01 : f32
    %7 = vector.broadcast %cst_5 : f32 to vector<32x32xf32>
    %8 = arith.mulf %7, %6 : vector<32x32xf32>
    %9 = math.tanh %8 : vector<32x32xf32>
    %cst_6 = arith.constant 5.000000e-01 : f32
    %10 = vector.broadcast %cst_6 : f32 to vector<32x32xf32>
    %11 = arith.mulf %10, %9 : vector<32x32xf32>
    %cst_7 = arith.constant 5.000000e-01 : f32
    %12 = vector.broadcast %cst_7 : f32 to vector<32x32xf32>
    %13 = arith.addf %11, %12 : vector<32x32xf32>
    %14 = arith.mulf %6, %13 : vector<32x32xf32>
    %15 = arith.truncf %14 : vector<32x32xf32> to vector<32x32xbf16>
    %c0_8 = arith.constant 0 : index
    %c0_9 = arith.constant 0 : index
    %16 = vector.load %arg5[%c0_8, %c0_9] : memref<32x16xbf16, #tpu.memory_space<vmem>>, vector<32x16xbf16>
    %cst_10 = arith.constant dense<0.000000e+00> : vector<32x16xf32>
    %17 = tpu.matmul %15, %16, %cst_10 {dimension_numbers = #tpu.dot_dimension_numbers<[1], [0], [0], [1], [0, 0, 1, 1], [], []>} : vector<32x32xbf16>, vector<32x16xbf16>, vector<32x16xf32> -> vector<32x16xf32>
    %c0_11 = arith.constant 0 : index
    %c0_12 = arith.constant 0 : index
    %18 = vector.load %arg6[%c0_11, %c0_12] : memref<1x16xf32, #tpu.memory_space<vmem>>, vector<1x16xf32>
    %19 = vector.broadcast %18 : vector<1x16xf32> to vector<32x16xf32>
    %20 = arith.addf %17, %19 : vector<32x16xf32>
    %cst_13 = arith.constant 5.000000e-01 : f32
    %21 = vector.broadcast %cst_13 : f32 to vector<32x16xf32>
    %22 = arith.mulf %21, %20 : vector<32x16xf32>
    %23 = math.tanh %22 : vector<32x16xf32>
    %cst_14 = arith.constant 5.000000e-01 : f32
    %24 = vector.broadcast %cst_14 : f32 to vector<32x16xf32>
    %25 = arith.mulf %24, %23 : vector<32x16xf32>
    %cst_15 = arith.constant 5.000000e-01 : f32
    %26 = vector.broadcast %cst_15 : f32 to vector<32x16xf32>
    %27 = arith.addf %25, %26 : vector<32x16xf32>
    %28 = arith.mulf %20, %27 : vector<32x16xf32>
    %c0_16 = arith.constant 0 : index
    %c0_17 = arith.constant 0 : index
    %29 = vector.load %arg1[%c0_16, %c0_17] : memref<32x64xf32, #tpu.memory_space<vmem>>, vector<32x64xf32>
    %30 = arith.truncf %29 : vector<32x64xf32> to vector<32x64xbf16>
    %c0_18 = arith.constant 0 : index
    %c0_19 = arith.constant 0 : index
    %31 = vector.load %arg7[%c0_18, %c0_19] : memref<64x32xbf16, #tpu.memory_space<vmem>>, vector<64x32xbf16>
    %cst_20 = arith.constant dense<0.000000e+00> : vector<32x32xf32>
    %32 = tpu.matmul %30, %31, %cst_20 {dimension_numbers = #tpu.dot_dimension_numbers<[1], [0], [0], [1], [0, 0, 1, 1], [], []>} : vector<32x64xbf16>, vector<64x32xbf16>, vector<32x32xf32> -> vector<32x32xf32>
    %33 = arith.truncf %28 : vector<32x16xf32> to vector<32x16xbf16>
    %c0_21 = arith.constant 0 : index
    %c0_22 = arith.constant 0 : index
    %34 = vector.load %arg8[%c0_21, %c0_22] : memref<16x32xbf16, #tpu.memory_space<vmem>>, vector<16x32xbf16>
    %cst_23 = arith.constant dense<0.000000e+00> : vector<32x32xf32>
    %35 = tpu.matmul %33, %34, %cst_23 {dimension_numbers = #tpu.dot_dimension_numbers<[1], [0], [0], [1], [0, 0, 1, 1], [], []>} : vector<32x16xbf16>, vector<16x32xbf16>, vector<32x32xf32> -> vector<32x32xf32>
    %36 = arith.addf %32, %35 : vector<32x32xf32>
    %c0_24 = arith.constant 0 : index
    %c0_25 = arith.constant 0 : index
    %37 = vector.load %arg9[%c0_24, %c0_25] : memref<1x32xf32, #tpu.memory_space<vmem>>, vector<1x32xf32>
    %38 = vector.broadcast %37 : vector<1x32xf32> to vector<32x32xf32>
    %39 = arith.addf %36, %38 : vector<32x32xf32>
    %cst_26 = arith.constant 5.000000e-01 : f32
    %40 = vector.broadcast %cst_26 : f32 to vector<32x32xf32>
    %41 = arith.mulf %40, %39 : vector<32x32xf32>
    %42 = math.tanh %41 : vector<32x32xf32>
    %cst_27 = arith.constant 5.000000e-01 : f32
    %43 = vector.broadcast %cst_27 : f32 to vector<32x32xf32>
    %44 = arith.mulf %43, %42 : vector<32x32xf32>
    %cst_28 = arith.constant 5.000000e-01 : f32
    %45 = vector.broadcast %cst_28 : f32 to vector<32x32xf32>
    %46 = arith.addf %44, %45 : vector<32x32xf32>
    %47 = arith.mulf %39, %46 : vector<32x32xf32>
    %48 = arith.truncf %47 : vector<32x32xf32> to vector<32x32xbf16>
    %c0_29 = arith.constant 0 : index
    %c0_30 = arith.constant 0 : index
    %49 = vector.load %arg10[%c0_29, %c0_30] : memref<32x128xbf16, #tpu.memory_space<vmem>>, vector<32x128xbf16>
    %cst_31 = arith.constant dense<0.000000e+00> : vector<32x128xf32>
    %50 = tpu.matmul %48, %49, %cst_31 {dimension_numbers = #tpu.dot_dimension_numbers<[1], [0], [0], [1], [0, 0, 1, 1], [], []>} : vector<32x32xbf16>, vector<32x128xbf16>, vector<32x128xf32> -> vector<32x128xf32>
    %c0_32 = arith.constant 0 : index
    %c0_33 = arith.constant 0 : index
    %51 = vector.load %arg11[%c0_32, %c0_33] : memref<1x128xf32, #tpu.memory_space<vmem>>, vector<1x128xf32>
    %52 = vector.broadcast %51 : vector<1x128xf32> to vector<32x128xf32>
    %53 = arith.addf %50, %52 : vector<32x128xf32>
    %cst_34 = arith.constant 5.000000e-01 : f32
    %54 = vector.broadcast %cst_34 : f32 to vector<32x128xf32>
    %55 = arith.mulf %54, %53 : vector<32x128xf32>
    %56 = math.tanh %55 : vector<32x128xf32>
    %cst_35 = arith.constant 5.000000e-01 : f32
    %57 = vector.broadcast %cst_35 : f32 to vector<32x128xf32>
    %58 = arith.mulf %57, %56 : vector<32x128xf32>
    %cst_36 = arith.constant 5.000000e-01 : f32
    %59 = vector.broadcast %cst_36 : f32 to vector<32x128xf32>
    %60 = arith.addf %58, %59 : vector<32x128xf32>
    %61 = arith.mulf %53, %60 : vector<32x128xf32>
    %c0_37 = arith.constant 0 : index
    %c0_38 = arith.constant 0 : index
    %62 = vector.load %arg12[%c0_37, %c0_38] : memref<32x128xf32, #tpu.memory_space<vmem>>, vector<32x128xf32>
    tpu.vector_store %arg12[%c0_37, %c0_38], %61 {strides = array<i32>} : memref<32x128xf32, #tpu.memory_space<vmem>>, vector<32x128xf32>,
    return
  }
  func.func @transform_0(%arg0: i32) -> (i32, i32) {
    %c0_i32 = arith.constant 0 : i32
    %c0_i32_0 = arith.constant 0 : i32
    return %arg0, %c0_i32 : i32, i32
  }
  func.func @transform_1(%arg0: i32) -> (i32, i32) {
    %c0_i32 = arith.constant 0 : i32
    %c0_i32_0 = arith.constant 0 : i32
    return %arg0, %c0_i32 : i32, i32
  }
  func.func @transform_2(%arg0: i32) -> (i32, i32) {
    %c0_i32 = arith.constant 0 : i32
    %c0_i32_0 = arith.constant 0 : i32
    %c0_i32_1 = arith.constant 0 : i32
    return %c0_i32, %c0_i32_0 : i32, i32
  }
  func.func @transform_3(%arg0: i32) -> (i32, i32) {
    %c0_i32 = arith.constant 0 : i32
    %c0_i32_0 = arith.constant 0 : i32
    %c0_i32_1 = arith.constant 0 : i32
    return %c0_i32, %c0_i32_0 : i32, i32
  }
  func.func @transform_4(%arg0: i32) -> (i32, i32) {
    %c0_i32 = arith.constant 0 : i32
    %c0_i32_0 = arith.constant 0 : i32
    %c0_i32_1 = arith.constant 0 : i32
    return %c0_i32, %c0_i32_0 : i32, i32
  }
  func.func @transform_5(%arg0: i32) -> (i32, i32) {
    %c0_i32 = arith.constant 0 : i32
    %c0_i32_0 = arith.constant 0 : i32
    %c0_i32_1 = arith.constant 0 : i32
    return %c0_i32, %c0_i32_0 : i32, i32
  }
  func.func @transform_6(%arg0: i32) -> (i32, i32) {
    %c0_i32 = arith.constant 0 : i32
    %c0_i32_0 = arith.constant 0 : i32
    %c0_i32_1 = arith.constant 0 : i32
    return %c0_i32, %c0_i32_0 : i32, i32
  }
  func.func @transform_7(%arg0: i32) -> (i32, i32) {
    %c0_i32 = arith.constant 0 : i32
    %c0_i32_0 = arith.constant 0 : i32
    %c0_i32_1 = arith.constant 0 : i32
    return %c0_i32, %c0_i32_0 : i32, i32
  }
  func.func @transform_8(%arg0: i32) -> (i32, i32) {
    %c0_i32 = arith.constant 0 : i32
    %c0_i32_0 = arith.constant 0 : i32
    %c0_i32_1 = arith.constant 0 : i32
    return %c0_i32, %c0_i32_0 : i32, i32
  }
  func.func @transform_9(%arg0: i32) -> (i32, i32) {
    %c0_i32 = arith.constant 0 : i32
    %c0_i32_0 = arith.constant 0 : i32
    %c0_i32_1 = arith.constant 0 : i32
    return %c0_i32, %c0_i32_0 : i32, i32
  }
  func.func @transform_10(%arg0: i32) -> (i32, i32) {
    %c0_i32 = arith.constant 0 : i32
    %c0_i32_0 = arith.constant 0 : i32
    %c0_i32_1 = arith.constant 0 : i32
    return %c0_i32, %c0_i32_0 : i32, i32
  }
  func.func @transform_11(%arg0: i32) -> (i32, i32) {
    %c0_i32 = arith.constant 0 : i32
    %c0_i32_0 = arith.constant 0 : i32
    return %arg0, %c0_i32 : i32, i32
  }
}

</mosaic_0001>

<bundles_post_ra>
// kernel: tpu_custom_call.1
= control target key start
LH: loop header
LB: loop body
LE: loop exit
PB: predicated region body
PF: predicated region fallthrough
CT: control target
= control target key end

     0   :  { %s1247_s0 = inlined_call_operand.vmem [shape: f32[128,64], index: 0, kind: input, shape index: {}]   ;;  %s1248_s1 = inlined_call_operand.vmem [shape: f32[128,8], index: 1, kind: input, shape index: {}]   ;;  %s1249_s2 = inlined_call_operand.vmem [shape: bf16[8,32], index: 2, kind: input, shape index: {}]   ;;  %s1250_s3 = inlined_call_operand.vmem [shape: f32[1,32], index: 3, kind: input, shape index: {}]   ;;  %s1251_s4 = inlined_call_operand.vmem [shape: bf16[32,16], index: 4, kind: input, shape index: {}]   ;;  %s1252_s5 = inlined_call_operand.vmem [shape: f32[1,16], index: 5, kind: input, shape index: {}]   ;;  %s1253_s6 = inlined_call_operand.vmem [shape: bf16[64,32], index: 6, kind: input, shape index: {}]   ;;  %s1254_s7 = inlined_call_operand.vmem [shape: bf16[16,32], index: 7, kind: input, shape index: {}]   ;;  %s1255_s8 = inlined_call_operand.vmem [shape: f32[1,32], index: 8, kind: input, shape index: {}]   ;;  %s1256_s9 = inlined_call_operand.vmem [shape: bf16[32,128], index: 9, kind: input, shape index: {}]   ;;  %s1257_s10 = inlined_call_operand.vmem [shape: f32[1,128], index: 10, kind: input, shape index: {}]   ;;  %s1258_s11 = inlined_call_operand.hbm [shape: f32[128,128], index: 11, kind: output, shape index: {}]  }
   0x1   :  { %1259 = sst [smem:[#allocation5_spill]] %s1248_s1 }
   0x2   :  { %1260 = sst [smem:[#allocation6_spill]] %s1249_s2 }
   0x3   :  { %1261 = sst [smem:[#allocation7_spill]] %s1250_s3 }
   0x4   :  { %16 = vsyncpa [#allocation3], 0 }
   0x5   :  { %18 = vsyncpa [#allocation3 + $0x1], 0  ;;  %s1103_s17 = smov 0   ;;  %s1105_s18 = smov 0  }
   0x6   :  { %s1107_s19 = smov 0   ;;  %s1109_s20 = smov 0  }
   0x7 LB: > { %s1124_s21 = sadd.s32 4294967295, %s1039_s20   ;;  %s829_s22 = sadd.s32 4294967294, %s1039_s20   ;;  %s1039_s20 = sphi %s1109_s20, %s1270_s20   ;;  %s1035_s19 = sphi %s1107_s19, %s1269_s19   ;;  %s1031_s18 = sphi %s1105_s18, %s1268_s18   ;;  %s1027_s17 = sphi %s1103_s17, %s1267_s17  }
   0x8   : > { %s1128_s23 = sadd.s32 1, %s1039_s20   ;;  %s272_s24 = sadd.s32 1, %s1035_s19 }
   0x9   : > { %s269_s25 = ssub.s32 %s1039_s20, %s1128_s23  ;;  %p282_p0 = scmp.ne.s32.totalorder %s1035_s19, %s1031_s18 }
   0xa   : > { %p270_p1 = scmp.eq.s32.totalorder %s269_s25, 0  ;;  %p283_p2 = scmp.eq.s32.totalorder %s1124_s21, 3 }
   0xb   : > { %p288_p3 = scmp.ne.s32.totalorder %s1031_s18, %s1027_s17  ;;  %p289_p4 = scmp.eq.s32.totalorder %s829_s22, 3 }
   0xc   : > { %s1139_s26 = scalar_select %p270_p1, %s1035_s19, %s272_s24  }
   0xd   : > { %p1141_p5 = por %p283_p2, %p282_p0  ;;  %p1145_p6 = por %p289_p4, %p288_p3 }
   0xe   : > { %p832_p7 = scmp.ge.s32.totalorder %s1039_s20, 1  ;;  %p352_p8 = scmp.lt.s32.totalorder %s1039_s20, 5 }
  0x10   : > { %p353_p9 = pnand %p832_p7, %p352_p8 }
  0x11   : > { %s1264_s2 = sld [smem:[#allocation6_spill]] (!%p353_p9)  ;;  %s834_s12 = sshll.u32 (!%p353_p9), %s1124_s21, 2 }
  0x12   : > { %356 = sbr.rel (%p353_p9) target bundleno = 667 (0x29b), region = 64  ;;  %p398_p10 = scmp.lt.s32.totalorder (!%p353_p9), %s834_s12, 15 }
  0x13   : > { %s1265_s1 = sld [smem:[#allocation5_spill]] (!%p353_p9)  ;;  %s394_s14 = sand.u32 (!%p353_p9), 1, %s1031_s18  }
  0x14   : > { %s1266_s3 = sld [smem:[#allocation7_spill]] (!%p353_p9)  ;;  %s833_s15 = sshll.u32 (!%p353_p9), %s394_s14, 5 }
  0x15   : > { %s740_s24 = scalar_lea.sflag (!%p353_p9), [#allocation3], %s394_s14 }
  0x17   : > { %v417_v0 = vld [vmem:[%s1264_s2] sm:$0xf]  ;;  %vm429_vm0 = vcmask 1043456   ;;  %s1272_s12 = smov (!%p398_p10, %s834_s12), 15  ;;  %vm422_vm1 = vcmask 64512   ;;  %v890_v8 = vld [vmem:[%s1251_s4 + $0x8] sm:$0xff] }
  0x18   : > { %v431_v1 = vsel %vm429_vm0, %v417_v0, 0  ;;  %s835_s13 = sshll.u32 %s1272_s12, 3  ;;  %507 = vmatpush.bf16.msra.mxu1 %v890_v8  ;;  %v889_v9 = vld [vmem:[%s1251_s4] sm:$0xff]  ;;  %vm494_vm2 = vcmask 261120   ;;  %v894_v41 = vld [vmem:[%s1253_s6 + $0x18] sm:$0xff]  ;;  %v893_v42 = vld [vmem:[%s1253_s6 + $0x10] sm:$0xff] }
  0x19   : > { %440 = vmatpush.bf16.msra.mxu0 %v431_v1  ;;  %899 = vmatpush.bf16.msra.mxu2 %v431_v1  ;;  %s407_s16 = scalar_lea.vmem %s1265_s1, %s835_s13  ;;  %v892_v43 = vld [vmem:[%s1253_s6 + $0x8] sm:$0xff]  ;;  %s401_s1 = scalar_lea.vmem %s1247_s0, %s835_s13  ;;  %v891_v44 = vld [vmem:[%s1253_s6] sm:$0xff]  ;;  %vm614_vm3 = vcmask 523264   ;;  %vm564_vm4 = vcmask 130048  }
  0x1a   : > { %v411_v2 = vld [vmem:[%s407_s16] sm:$0xff]  ;;  %v412_v3 = vld [vmem:[%s407_s16 + $0x8] sm:$0xff]  ;;  %v413_v4 = vld [vmem:[%s407_s16 + $0x10] sm:$0xff]  ;;  %625 = vmatpush.bf16.msra.mxu3 %v894_v41  ;;  %s898_s12 = sshll.u32 %s1124_s21, 5 }
  0x1b   : > { %v415_v5 = vpack.c.bf16 %v412_v3, %v411_v2  ;;  %v414_v6 = vld [vmem:[%s407_s16 + $0x18] sm:$0xff]  ;;  %v941_v10 = vld [vmem:[%s1266_s3] ss:$0 sm:$0xff]  ;;  %v541_v46 = vld [vmem:[%s401_s1 + $0x8] sm:$0xff]  ;;  %s396_s16 = scalar_lea.vmem [#allocation2], %s833_s15  ;;  %s751_s2 = scalar_lea.hbm %s1258_s11, %s898_s12 }
  0x1c   : > { %v416_v7 = vpack.c.bf16 %v414_v6, %v413_v4  ;;  %508 = vmatpush.bf16.msra.mxu1 %v889_v9  ;;  %v540_v45 = vld [vmem:[%s401_s1] sm:$0xff]  ;;  %v542_v52 = vld [vmem:[%s401_s1 + $0x10] sm:$0xff]  ;;  %v543_v53 = vld [vmem:[%s401_s1 + $0x18] sm:$0xff]  ;;  %s752_s3 = sshll.u32 %s396_s16, 4  ;;  %s754_s13 = sshll.u32 %s751_s2, 4  ;;  %s753_s3 = int_to_ptr.vmem [resolvable:$true] %s752_s3  ;;  %s755_s13 = int_to_ptr.hbm [resolvable:$true] %s754_s13 }
  0x1d   : > { %838 = vmatmul.msk.bf16.vlgmr.msra.gmra.mxu0 %vm422_vm1, %v415_v5  ;;  %v544_v47 = vpack.c.bf16 %v541_v46, %v540_v45  ;;  %v895_v48 = vld [vmem:[%s1254_s7] sm:$0xff]  ;;  %v545_v55 = vpack.c.bf16 %v543_v53, %v542_v52  ;;  %s991_s25 = sshra.s32 %s755_s13, 4  ;;  %s997_s15 = scalar_lea.hbm %s1258_s11, 128  ;;  %s992_s25 = int_to_ptr.hbm [resolvable:$true] %s991_s25 }
  0x1e   : > { %839 = vmatmul.msk.bf16.vlgmr.msra.gmra.mxu2 %vm422_vm1, %v416_v7  ;;  %626 = vmatpush.bf16.msra.mxu3 %v893_v42  ;;  %v942_v49 = vld [vmem:[%s1252_s5] ss:$0 sm:$0xff]  ;;  %s993_s21 = scalar_lea.hbm %s992_s25, 32  ;;  %p998_p0 = scmp.lt.s32.totalorder %s992_s25, %s1258_s11 }
  0x1f   : > { %578 = vmatpush.bf16.msrb.mxu2 %v895_v48  ;;  %p994_p11 = scmp.ne.s32.totalorder %s992_s25, %s993_s21  ;;  %p999_p1 = scmp.lt.s32.totalorder %s997_s15, %s993_s21 }
  0x21   : > { %p995_p12 = pnand %p994_p11, %p1141_p5  ;;  %p1000_p2 = por %p999_p1, %p998_p0 }
  0x22   : > { %627 = vmatpush.bf16.msra.mxu3 %v892_v43 }
  0x23   : > { %p996_p13 = pneg %p995_p12 }
  0x25   : > { %p1001_p3 = pnand %p1000_p2, %p996_p13 }
  0x26   : > { %628 = vmatpush.bf16.msra.mxu3 %v891_v44 }
  0x29   : > { %872 = vmatmul.msk.bf16.vlgmr.msra.gmra.mxu3 %vm614_vm3, %v544_v47 }
  0x39   : > { %873 = vmatmul.msk.bf16.gmra.mxu3 %vm614_vm3, %v545_v55 }
  0x9a   : > { %v442_v11 = vpop.f32.mrf.mxu0 }
  0x9b   : > { %v443_v12 = vadd.f32 %v941_v10, %v442_v11 }
  0x9d   : > { %v452_v13 = vmul.f32 0.5, %v443_v12 }
  0x9f   : > { %945 = vtanh.f32 %v452_v13 }
  0xa1   : > { %v447_v14 = vpop.f32.mrf.mxu2 }
  0xa2   : > { %v444_v15 = vpop.f32.mrf.mxu0  ;;  %v448_v19 = vadd.f32 %v941_v10, %v447_v14 }
  0xa3   : > { %v445_v16 = vadd.f32 %v941_v10, %v444_v15 }
  0xa4   : > { %v454_v25 = vmul.f32 0.5, %v448_v19 }
  0xa5   : > { %v453_v17 = vmul.f32 0.5, %v445_v16  ;;  %v946_v18 = vpop.eup %945 }
  0xa6   : > { %v460_v21 = vmul.f32 0.5, %v946_v18 }
  0xa7   : > { %947 = vtanh.f32 %v453_v17 }
  0xa8   : > { %v464_v26 = vadd.f32 0.5, %v460_v21  ;;  %v896_v21 = vld [vmem:[%s1256_s9] sm:$0xff] }
  0xa9   : > { %v449_v20 = vpop.f32.mrf.mxu2 }
  0xaa   : > { %v450_v22 = vadd.f32 %v941_v10, %v449_v20  ;;  %v468_v29 = vmul.f32 %v464_v26, %v443_v12 }
  0xac   : > { %v455_v23 = vmul.f32 0.5, %v450_v22  ;;  %v630_v20 = vpop.f32.mrf.mxu3 }
  0xad   : > { %v948_v24 = vpop.eup %947 }
  0xae   : > { %v461_v27 = vmul.f32 0.5, %v948_v24  ;;  %949 = vtanh.f32 %v455_v23 }
  0xaf   : > { %951 = vtanh.f32 %v454_v25 }
  0xb0   : > { %v465_v28 = vadd.f32 0.5, %v461_v27 }
  0xb2   : > { %v469_v30 = vmul.f32 %v465_v28, %v445_v16 }
  0xb4   : > { %v472_v31 = vpack.c.bf16 %v469_v30, %v468_v29  ;;  %v950_v32 = vpop.eup %949  ;;  %v632_v26 = vpop.f32.mrf.mxu3 }
  0xb5   : > { %v952_v33 = vpop.eup %951  ;;  %v463_v34 = vmul.f32 0.5, %v950_v32 }
  0xb6   : > { %848 = vmatmul.msk.bf16.vlgmr.msra.gmra.mxu1 %vm494_vm2, %v472_v31  ;;  %v462_v35 = vmul.f32 0.5, %v952_v33 }
  0xb7   : > { %v467_v36 = vadd.f32 0.5, %v463_v34 }
  0xb8   : > { %v466_v37 = vadd.f32 0.5, %v462_v35 }
  0xb9   : > { %v471_v38 = vmul.f32 %v467_v36, %v450_v22  ;;  %v943_v22 = vld [vmem:[%s1255_s8] ss:$0 sm:$0xff] }
  0xba   : > { %v470_v39 = vmul.f32 %v466_v37, %v448_v19  ;;  %v897_v19 = vld [vmem:[%s1256_s9 + $0x8] sm:$0xff] }
  0xbb   : > { %702 = vmatpush.bf16.msrb.mxu0 %v897_v19 }
  0xbc   : > { %v473_v40 = vpack.c.bf16 %v471_v38, %v470_v39  ;;  %v635_v32 = vpop.f32.mrf.mxu3 }
  0xbf   : > { %703 = vmatpush.bf16.msrb.mxu0 %v896_v21 }
  0xc4   : > { %v637_v43 = vpop.f32.mrf.mxu3 }
  0xc6   : > { %849 = vmatmul.msk.bf16.gmra.mxu1 %vm494_vm2, %v473_v40 }
 0x133   : > { %v510_v50 = vpop.f32.mrf.mxu1 }
 0x134   : > { %v511_v51 = vadd.f32 %v942_v49, %v510_v50 }
 0x136   : > { %v520_v54 = vmul.f32 0.5, %v511_v51 }
 0x138   : > { %953 = vtanh.f32 %v520_v54 }
 0x13b   : > { %v512_v56 = vpop.f32.mrf.mxu1 }
 0x13c   : > { %v513_v57 = vadd.f32 %v942_v49, %v512_v56 }
 0x13e   : > { %v521_v58 = vmul.f32 0.5, %v513_v57  ;;  %v954_v59 = vpop.eup %953 }
 0x13f   : > { %v528_v60 = vmul.f32 0.5, %v954_v59 }
 0x140   : > { %955 = vtanh.f32 %v521_v58 }
 0x141   : > { %v532_v1 = vadd.f32 0.5, %v528_v60  ;;  %v944_v60 = vld [vmem:[%s1257_s10] ss:$0 sm:$0xff] }
 0x143   : > { %v515_v61 = vpop.f32.mrf.mxu1  ;;  %v536_v4 = vmul.f32 %v532_v1, %v511_v51 }
 0x144   : > { %v516_v62 = vadd.f32 %v942_v49, %v515_v61 }
 0x146   : > { %v956_v63 = vpop.eup %955  ;;  %v522_v0 = vmul.f32 0.5, %v516_v62 }
 0x147   : > { %v529_v2 = vmul.f32 0.5, %v956_v63 }
 0x148   : > { %957 = vtanh.f32 %v522_v0 }
 0x149   : > { %v533_v3 = vadd.f32 0.5, %v529_v2 }
 0x14b   : > { %v537_v5 = vmul.f32 %v533_v3, %v513_v57  ;;  %v517_v6 = vpop.f32.mrf.mxu1 }
 0x14c   : > { %v518_v7 = vadd.f32 %v942_v49, %v517_v6 }
 0x14d   : > { %v554_v8 = vpack.c.bf16 %v537_v5, %v536_v4 }
 0x14e   : > { %v523_v9 = vmul.f32 0.5, %v518_v7  ;;  %v958_v10 = vpop.eup %957 }
 0x14f   : > { %854 = vmatmul.msk.bf16.vlgmr.msrb.gmra.mxu2 %vm564_vm4, %v554_v8  ;;  %v530_v11 = vmul.f32 0.5, %v958_v10 }
 0x150   : > { %959 = vtanh.f32 %v523_v9 }
 0x151   : > { %v534_v13 = vadd.f32 0.5, %v530_v11 }
 0x153   : > { %v538_v16 = vmul.f32 %v534_v13, %v516_v62 }
 0x156   : > { %v960_v12 = vpop.eup %959 }
 0x157   : > { %v531_v14 = vmul.f32 0.5, %v960_v12 }
 0x159   : > { %v535_v15 = vadd.f32 0.5, %v531_v14 }
 0x15b   : > { %v539_v17 = vmul.f32 %v535_v15, %v518_v7 }
 0x15d   : > { %v555_v18 = vpack.c.bf16 %v539_v17, %v538_v16 }
 0x15f   : > { %855 = vmatmul.msk.bf16.gmra.mxu2 %vm564_vm4, %v555_v18 }
 0x1d2   : > { %v580_v23 = vpop.f32.mrf.mxu2 }
 0x1d3   : > { %v631_v24 = vadd.f32 %v630_v20, %v580_v23 }
 0x1d5   : > { %v644_v25 = vadd.f32 %v943_v22, %v631_v24 }
 0x1d7   : > { %v648_v27 = vmul.f32 0.5, %v644_v25 }
 0x1d9   : > { %961 = vtanh.f32 %v648_v27 }
 0x1da   : > { %v582_v28 = vpop.f32.mrf.mxu2 }
 0x1db   : > { %v633_v29 = vadd.f32 %v632_v26, %v582_v28 }
 0x1dd   : > { %v645_v30 = vadd.f32 %v943_v22, %v633_v29 }
 0x1df   : > { %v649_v31 = vmul.f32 0.5, %v645_v30  ;;  %v962_v33 = vpop.eup %961 }
 0x1e0   : > { %v656_v36 = vmul.f32 0.5, %v962_v33 }
 0x1e1   : > { %963 = vtanh.f32 %v649_v31 }
 0x1e2   : > { %v585_v34 = vpop.f32.mrf.mxu2  ;;  %v660_v40 = vadd.f32 0.5, %v656_v36 }
 0x1e3   : > { %v636_v35 = vadd.f32 %v635_v32, %v585_v34 }
 0x1e4   : > { %v664_v46 = vmul.f32 %v660_v40, %v644_v25 }
 0x1e5   : > { %v646_v37 = vadd.f32 %v943_v22, %v636_v35 }
 0x1e7   : > { %v964_v38 = vpop.eup %963  ;;  %v650_v39 = vmul.f32 0.5, %v646_v37 }
 0x1e8   : > { %v657_v41 = vmul.f32 0.5, %v964_v38 }
 0x1e9   : > { %965 = vtanh.f32 %v650_v39 }
 0x1ea   : > { %v661_v42 = vadd.f32 0.5, %v657_v41  ;;  %v587_v44 = vpop.f32.mrf.mxu2 }
 0x1eb   : > { %v638_v45 = vadd.f32 %v637_v43, %v587_v44 }
 0x1ec   : > { %v665_v47 = vmul.f32 %v661_v42, %v645_v30 }
 0x1ed   : > { %v647_v48 = vadd.f32 %v943_v22, %v638_v45 }
 0x1ee   : > { %v668_v49 = vpack.c.bf16 %v665_v47, %v664_v46 }
 0x1ef   : > { %v651_v50 = vmul.f32 0.5, %v647_v48  ;;  %v966_v51 = vpop.eup %965 }
 0x1f0   : > { %882 = vmatmul.msk.bf16.vlgmr.msrb.gmra.mxu0 %vm494_vm2, %v668_v49  ;;  %v658_v52 = vmul.f32 0.5, %v966_v51 }
 0x1f1   : > { %967 = vtanh.f32 %v651_v50 }
 0x1f2   : > { %v662_v54 = vadd.f32 0.5, %v658_v52 }
 0x1f4   : > { %v666_v57 = vmul.f32 %v662_v54, %v646_v37 }
 0x1f7   : > { %v968_v53 = vpop.eup %967 }
 0x1f8   : > { %v659_v55 = vmul.f32 0.5, %v968_v53 }
 0x1fa   : > { %v663_v56 = vadd.f32 0.5, %v659_v55 }
 0x1fc   : > { %v667_v58 = vmul.f32 %v663_v56, %v647_v48 }
 0x1fe   : > { %v669_v59 = vpack.c.bf16 %v667_v58, %v666_v57 }
 0x200   : > { %883 = vmatmul.msk.bf16.gmra.mxu0 %vm494_vm2, %v669_v59 }
 0x26d   : > { %v705_v61 = vpop.f32.mrf.mxu0 }
 0x26e   : > { %v706_v62 = vadd.f32 %v944_v60, %v705_v61 }
 0x270   : > { %v715_v63 = vmul.f32 0.5, %v706_v62 }
 0x272   : > { %969 = vtanh.f32 %v715_v63 }
 0x275   : > { %v707_v0 = vpop.f32.mrf.mxu0 }
 0x276   : > { %v708_v1 = vadd.f32 %v944_v60, %v707_v0 }
 0x278   : > { %v970_v2 = vpop.eup %969  ;;  %v716_v3 = vmul.f32 0.5, %v708_v1 }
 0x279   : > { %v723_v4 = vmul.f32 0.5, %v970_v2 }
 0x27a   : > { %971 = vtanh.f32 %v716_v3 }
 0x27b   : > { %v727_v5 = vadd.f32 0.5, %v723_v4 }
 0x27d   : > { %v731_v6 = vmul.f32 %v727_v5, %v706_v62  ;;  %v710_v7 = vpop.f32.mrf.mxu0 }
 0x27e   : > { %v711_v8 = vadd.f32 %v944_v60, %v710_v7 }
 0x27f   : > { %735 = vst [vmem:[%s396_s16] sm:$0xff] %v731_v6 }
 0x280   : > { %v972_v9 = vpop.eup %971  ;;  %v717_v10 = vmul.f32 0.5, %v711_v8 }
 0x281   : > { %v724_v11 = vmul.f32 0.5, %v972_v9 }
 0x282   : > { %973 = vtanh.f32 %v717_v10 }
 0x283   : > { %v728_v12 = vadd.f32 0.5, %v724_v11 }
 0x285   : > { %v732_v13 = vmul.f32 %v728_v12, %v708_v1  ;;  %v712_v14 = vpop.f32.mrf.mxu0 }
 0x286   : > { %v713_v15 = vadd.f32 %v944_v60, %v712_v14 }
 0x287   : > { %736 = vst [vmem:[%s396_s16 + $0x8] sm:$0xff] %v732_v13 }
 0x288   : > { %v974_v16 = vpop.eup %973  ;;  %v718_v17 = vmul.f32 0.5, %v713_v15 }
 0x289   : > { %v725_v18 = vmul.f32 0.5, %v974_v16 }
 0x28a   : > { %975 = vtanh.f32 %v718_v17 }
 0x28b   : > { %v729_v19 = vadd.f32 0.5, %v725_v18 }
 0x28d   : > { %v733_v20 = vmul.f32 %v729_v19, %v711_v8 }
 0x28f   : > { %737 = vst [vmem:[%s396_s16 + $0x10] sm:$0xff] %v733_v20 }
 0x290   : > { %v976_v21 = vpop.eup %975 }
 0x291   : > { %v726_v22 = vmul.f32 0.5, %v976_v21 }
 0x293   : > { %v730_v23 = vadd.f32 0.5, %v726_v22 }
 0x295   : > { %v734_v24 = vmul.f32 %v730_v23, %v713_v15 }
 0x297   : > { %738 = vst [vmem:[%s396_s16 + $0x18] sm:$0xff] %v734_v24 }
 0x298   : > { %1004 = shalt.err (!%p1001_p3)
}
 0x299   : > { %s1041_s14 = smov 128   ;;  %s1042_s16 = smov 8  }
 0x29a   : > { %900 = dma.vmem_to_hbm [thread:$0]  (%p1141_p5), %s753_s3, 512, %s755_s13, %s740_s24, %s1041_s14, %s1041_s14, %s1042_s16  }
 0x29b PF: > { %p906_p4 = scmp.ge.s32.totalorder %s1039_s20, 2  ;;  %s769_s1 = sand.u32 1, %s1027_s17  }
 0x29c   : > { %s770_s2 = scalar_lea.sflag [#allocation3], %s769_s1 }
 0x29d   : > { %p903_p7 = pnand %p906_p4, %p1145_p6 }
 0x29f   : > { %p904_p8 = pneg %p903_p7 }
 0x2a1   : > { %1022 = dma.done.wait (%p904_p8), %s770_s2, 512  }
 0x2a2   : > { %1024 = vsyncadd (%p904_p8), %s770_s2, 4294966784  ;;  %p21_p9 = scmp.ge.s32.totalorder %s1128_s23, 6   ;;  %s1267_s17 = smov %s1031_s18 }
 0x2a3   : > { %s1268_s18 = smov %s1035_s19  ;;  %s1269_s19 = smov %s1139_s26 }
 0x2a4   : > { %s1270_s20 = smov %s1128_s23  ;;  %23 = sbr.rel (!%p21_p9) target bundleno = 7 (0x7), region = 102 }
 0x2a9   :  { %776 = vsyncpa [#allocation3], 1 }
 0x2aa   :  { %778 = vsyncpa [#allocation3 + $0x1], 1 }

// kernel: tpu_custom_call.1
= control target key start
LH: loop header
LB: loop body
LE: loop exit
PB: predicated region body
PF: predicated region fallthrough
CT: control target
= control target key end

     0   :  { %s1247_s0 = inlined_call_operand.vmem [shape: f32[128,64], index: 0, kind: input, shape index: {}]   ;;  %s1248_s1 = inlined_call_operand.vmem [shape: f32[128,8], index: 1, kind: input, shape index: {}]   ;;  %s1249_s2 = inlined_call_operand.vmem [shape: bf16[8,32], index: 2, kind: input, shape index: {}]   ;;  %s1250_s3 = inlined_call_operand.vmem [shape: f32[1,32], index: 3, kind: input, shape index: {}]   ;;  %s1251_s4 = inlined_call_operand.vmem [shape: bf16[32,16], index: 4, kind: input, shape index: {}]   ;;  %s1252_s5 = inlined_call_operand.vmem [shape: f32[1,16], index: 5, kind: input, shape index: {}]   ;;  %s1253_s6 = inlined_call_operand.vmem [shape: bf16[64,32], index: 6, kind: input, shape index: {}]   ;;  %s1254_s7 = inlined_call_operand.vmem [shape: bf16[16,32], index: 7, kind: input, shape index: {}]   ;;  %s1255_s8 = inlined_call_operand.vmem [shape: f32[1,32], index: 8, kind: input, shape index: {}]   ;;  %s1256_s9 = inlined_call_operand.vmem [shape: bf16[32,128], index: 9, kind: input, shape index: {}]   ;;  %s1257_s10 = inlined_call_operand.vmem [shape: f32[1,128], index: 10, kind: input, shape index: {}]   ;;  %s1258_s11 = inlined_call_operand.hbm [shape: f32[128,128], index: 11, kind: output, shape index: {}]  }
   0x1   :  { %1259 = sst [smem:[#allocation5_spill]] %s1248_s1 }
   0x2   :  { %1260 = sst [smem:[#allocation6_spill]] %s1249_s2 }
   0x3   :  { %1261 = sst [smem:[#allocation7_spill]] %s1250_s3 }
   0x4   :  { %16 = vsyncpa [#allocation3], 0 }
   0x5   :  { %18 = vsyncpa [#allocation3 + $0x1], 0  ;;  %s1103_s17 = smov 0   ;;  %s1105_s18 = smov 0  }
   0x6   :  { %s1107_s19 = smov 0   ;;  %s1109_s20 = smov 0  }
   0x7 LB: > { %s1124_s21 = sadd.s32 4294967295, %s1039_s20   ;;  %s829_s22 = sadd.s32 4294967294, %s1039_s20   ;;  %s1039_s20 = sphi %s1109_s20, %s1270_s20   ;;  %s1035_s19 = sphi %s1107_s19, %s1269_s19   ;;  %s1031_s18 = sphi %s1105_s18, %s1268_s18   ;;  %s1027_s17 = sphi %s1103_s17, %s1267_s17  }
   0x8   : > { %s1128_s23 = sadd.s32 1, %s1039_s20   ;;  %s272_s24 = sadd.s32 1, %s1035_s19 }
   0x9   : > { %s269_s25 = ssub.s32 %s1039_s20, %s1128_s23  ;;  %p282_p0 = scmp.ne.s32.totalorder %s1035_s19, %s1031_s18 }
   0xa   : > { %p270_p1 = scmp.eq.s32.totalorder %s269_s25, 0  ;;  %p283_p2 = scmp.eq.s32.totalorder %s1124_s21, 3 }
   0xb   : > { %p288_p3 = scmp.ne.s32.totalorder %s1031_s18, %s1027_s17  ;;  %p289_p4 = scmp.eq.s32.totalorder %s829_s22, 3 }
   0xc   : > { %s1139_s26 = scalar_select %p270_p1, %s1035_s19, %s272_s24  }
   0xd   : > { %p1141_p5 = por %p283_p2, %p282_p0  ;;  %p1145_p6 = por %p289_p4, %p288_p3 }
   0xe   : > { %p832_p7 = scmp.ge.s32.totalorder %s1039_s20, 1  ;;  %p352_p8 = scmp.lt.s32.totalorder %s1039_s20, 5 }
  0x10   : > { %p353_p9 = pnand %p832_p7, %p352_p8 }
  0x11   : > { %s1264_s2 = sld [smem:[#allocation6_spill]] (!%p353_p9)  ;;  %s834_s12 = sshll.u32 (!%p353_p9), %s1124_s21, 2 }
  0x12   : > { %356 = sbr.rel (%p353_p9) target bundleno = 667 (0x29b), region = 64  ;;  %p398_p10 = scmp.lt.s32.totalorder (!%p353_p9), %s834_s12, 15 }
  0x13   : > { %s1265_s1 = sld [smem:[#allocation5_spill]] (!%p353_p9)  ;;  %s394_s14 = sand.u32 (!%p353_p9), 1, %s1031_s18  }
  0x14   : > { %s1266_s3 = sld [smem:[#allocation7_spill]] (!%p353_p9)  ;;  %s833_s15 = sshll.u32 (!%p353_p9), %s394_s14, 5 }
  0x15   : > { %s740_s24 = scalar_lea.sflag (!%p353_p9), [#allocation3], %s394_s14 }
  0x17   : > { %v417_v0 = vld [vmem:[%s1264_s2] sm:$0xf]  ;;  %vm429_vm0 = vcmask 1043456   ;;  %s1272_s12 = smov (!%p398_p10, %s834_s12), 15  ;;  %vm422_vm1 = vcmask 64512   ;;  %v890_v8 = vld [vmem:[%s1251_s4 + $0x8] sm:$0xff] }
  0x18   : > { %v431_v1 = vsel %vm429_vm0, %v417_v0, 0  ;;  %s835_s13 = sshll.u32 %s1272_s12, 3  ;;  %507 = vmatpush.bf16.msra.mxu1 %v890_v8  ;;  %v889_v9 = vld [vmem:[%s1251_s4] sm:$0xff]  ;;  %vm494_vm2 = vcmask 261120   ;;  %v894_v41 = vld [vmem:[%s1253_s6 + $0x18] sm:$0xff]  ;;  %v893_v42 = vld [vmem:[%s1253_s6 + $0x10] sm:$0xff] }
  0x19   : > { %440 = vmatpush.bf16.msra.mxu0 %v431_v1  ;;  %899 = vmatpush.bf16.msra.mxu2 %v431_v1  ;;  %s407_s16 = scalar_lea.vmem %s1265_s1, %s835_s13  ;;  %v892_v43 = vld [vmem:[%s1253_s6 + $0x8] sm:$0xff]  ;;  %s401_s1 = scalar_lea.vmem %s1247_s0, %s835_s13  ;;  %v891_v44 = vld [vmem:[%s1253_s6] sm:$0xff]  ;;  %vm614_vm3 = vcmask 523264   ;;  %vm564_vm4 = vcmask 130048  }
  0x1a   : > { %v411_v2 = vld [vmem:[%s407_s16] sm:$0xff]  ;;  %v412_v3 = vld [vmem:[%s407_s16 + $0x8] sm:$0xff]  ;;  %v413_v4 = vld [vmem:[%s407_s16 + $0x10] sm:$0xff]  ;;  %625 = vmatpush.bf16.msra.mxu3 %v894_v41  ;;  %s898_s12 = sshll.u32 %s1124_s21, 5 }
  0x1b   : > { %v415_v5 = vpack.c.bf16 %v412_v3, %v411_v2  ;;  %v414_v6 = vld [vmem:[%s407_s16 + $0x18] sm:$0xff]  ;;  %v941_v10 = vld [vmem:[%s1266_s3] ss:$0 sm:$0xff]  ;;  %v541_v46 = vld [vmem:[%s401_s1 + $0x8] sm:$0xff]  ;;  %s396_s16 = scalar_lea.vmem [#allocation2], %s833_s15  ;;  %s751_s2 = scalar_lea.hbm %s1258_s11, %s898_s12 }
  0x1c   : > { %v416_v7 = vpack.c.bf16 %v414_v6, %v413_v4  ;;  %508 = vmatpush.bf16.msra.mxu1 %v889_v9  ;;  %v540_v45 = vld [vmem:[%s401_s1] sm:$0xff]  ;;  %v542_v52 = vld [vmem:[%s401_s1 + $0x10] sm:$0xff]  ;;  %v543_v53 = vld [vmem:[%s401_s1 + $0x18] sm:$0xff]  ;;  %s752_s3 = sshll.u32 %s396_s16, 4  ;;  %s754_s13 = sshll.u32 %s751_s2, 4  ;;  %s753_s3 = int_to_ptr.vmem [resolvable:$true] %s752_s3  ;;  %s755_s13 = int_to_ptr.hbm [resolvable:$true] %s754_s13 }
  0x1d   : > { %838 = vmatmul.msk.bf16.vlgmr.msra.gmra.mxu0 %vm422_vm1, %v415_v5  ;;  %v544_v47 = vpack.c.bf16 %v541_v46, %v540_v45  ;;  %v895_v48 = vld [vmem:[%s1254_s7] sm:$0xff]  ;;  %v545_v55 = vpack.c.bf16 %v543_v53, %v542_v52  ;;  %s991_s25 = sshra.s32 %s755_s13, 4  ;;  %s997_s15 = scalar_lea.hbm %s1258_s11, 128  ;;  %s992_s25 = int_to_ptr.hbm [resolvable:$true] %s991_s25 }
  0x1e   : > { %839 = vmatmul.msk.bf16.vlgmr.msra.gmra.mxu2 %vm422_vm1, %v416_v7  ;;  %626 = vmatpush.bf16.msra.mxu3 %v893_v42  ;;  %v942_v49 = vld [vmem:[%s1252_s5] ss:$0 sm:$0xff]  ;;  %s993_s21 = scalar_lea.hbm %s992_s25, 32  ;;  %p998_p0 = scmp.lt.s32.totalorder %s992_s25, %s1258_s11 }
  0x1f   : > { %578 = vmatpush.bf16.msrb.mxu2 %v895_v48  ;;  %p994_p11 = scmp.ne.s32.totalorder %s992_s25, %s993_s21  ;;  %p999_p1 = scmp.lt.s32.totalorder %s997_s15, %s993_s21 }
  0x21   : > { %p995_p12 = pnand %p994_p11, %p1141_p5  ;;  %p1000_p2 = por %p999_p1, %p998_p0 }
  0x22   : > { %627 = vmatpush.bf16.msra.mxu3 %v892_v43 }
  0x23   : > { %p996_p13 = pneg %p995_p12 }
  0x25   : > { %p1001_p3 = pnand %p1000_p2, %p996_p13 }
  0x26   : > { %628 = vmatpush.bf16.msra.mxu3 %v891_v44 }
  0x29   : > { %872 = vmatmul.msk.bf16.vlgmr.msra.gmra.mxu3 %vm614_vm3, %v544_v47 }
  0x39   : > { %873 = vmatmul.msk.bf16.gmra.mxu3 %vm614_vm3, %v545_v55 }
  0x9a   : > { %v442_v11 = vpop.f32.mrf.mxu0 }
  0x9b   : > { %v443_v12 = vadd.f32 %v941_v10, %v442_v11 }
  0x9d   : > { %v452_v13 = vmul.f32 0.5, %v443_v12 }
  0x9f   : > { %945 = vtanh.f32 %v452_v13 }
  0xa1   : > { %v447_v14 = vpop.f32.mrf.mxu2 }
  0xa2   : > { %v444_v15 = vpop.f32.mrf.mxu0  ;;  %v448_v19 = vadd.f32 %v941_v10, %v447_v14 }
  0xa3   : > { %v445_v16 = vadd.f32 %v941_v10, %v444_v15 }
  0xa4   : > { %v454_v25 = vmul.f32 0.5, %v448_v19 }
  0xa5   : > { %v453_v17 = vmul.f32 0.5, %v445_v16  ;;  %v946_v18 = vpop.eup %945 }
  0xa6   : > { %v460_v21 = vmul.f32 0.5, %v946_v18 }
  0xa7   : > { %947 = vtanh.f32 %v453_v17 }
  0xa8   : > { %v464_v26 = vadd.f32 0.5, %v460_v21  ;;  %v896_v21 = vld [vmem:[%s1256_s9] sm:$0xff] }
  0xa9   : > { %v449_v20 = vpop.f32.mrf.mxu2 }
  0xaa   : > { %v450_v22 = vadd.f32 %v941_v10, %v449_v20  ;;  %v468_v29 = vmul.f32 %v464_v26, %v443_v12 }
  0xac   : > { %v455_v23 = vmul.f32 0.5, %v450_v22  ;;  %v630_v20 = vpop.f32.mrf.mxu3 }
  0xad   : > { %v948_v24 = vpop.eup %947 }
  0xae   : > { %v461_v27 = vmul.f32 0.5, %v948_v24  ;;  %949 = vtanh.f32 %v455_v23 }
  0xaf   : > { %951 = vtanh.f32 %v454_v25 }
  0xb0   : > { %v465_v28 = vadd.f32 0.5, %v461_v27 }
  0xb2   : > { %v469_v30 = vmul.f32 %v465_v28, %v445_v16 }
  0xb4   : > { %v472_v31 = vpack.c.bf16 %v469_v30, %v468_v29  ;;  %v950_v32 = vpop.eup %949  ;;  %v632_v26 = vpop.f32.mrf.mxu3 }
  0xb5   : > { %v952_v33 = vpop.eup %951  ;;  %v463_v34 = vmul.f32 0.5, %v950_v32 }
  0xb6   : > { %848 = vmatmul.msk.bf16.vlgmr.msra.gmra.mxu1 %vm494_vm2, %v472_v31  ;;  %v462_v35 = vmul.f32 0.5, %v952_v33 }
  0xb7   : > { %v467_v36 = vadd.f32 0.5, %v463_v34 }
  0xb8   : > { %v466_v37 = vadd.f32 0.5, %v462_v35 }
  0xb9   : > { %v471_v38 = vmul.f32 %v467_v36, %v450_v22  ;;  %v943_v22 = vld [vmem:[%s1255_s8] ss:$0 sm:$0xff] }
  0xba   : > { %v470_v39 = vmul.f32 %v466_v37, %v448_v19  ;;  %v897_v19 = vld [vmem:[%s1256_s9 + $0x8] sm:$0xff] }
  0xbb   : > { %702 = vmatpush.bf16.msrb.mxu0 %v897_v19 }
  0xbc   : > { %v473_v40 = vpack.c.bf16 %v471_v38, %v470_v39  ;;  %v635_v32 = vpop.f32.mrf.mxu3 }
  0xbf   : > { %703 = vmatpush.bf16.msrb.mxu0 %v896_v21 }
  0xc4   : > { %v637_v43 = vpop.f32.mrf.mxu3 }
  0xc6   : > { %849 = vmatmul.msk.bf16.gmra.mxu1 %vm494_vm2, %v473_v40 }
 0x133   : > { %v510_v50 = vpop.f32.mrf.mxu1 }
 0x134   : > { %v511_v51 = vadd.f32 %v942_v49, %v510_v50 }
 0x136   : > { %v520_v54 = vmul.f32 0.5, %v511_v51 }
 0x138   : > { %953 = vtanh.f32 %v520_v54 }
 0x13b   : > { %v512_v56 = vpop.f32.mrf.mxu1 }
 0x13c   : > { %v513_v57 = vadd.f32 %v942_v49, %v512_v56 }
 0x13e   : > { %v521_v58 = vmul.f32 0.5, %v513_v57  ;;  %v954_v59 = vpop.eup %953 }
 0x13f   : > { %v528_v60 = vmul.f32 0.5, %v954_v59 }
 0x140   : > { %955 = vtanh.f32 %v521_v58 }
 0x141   : > { %v532_v1 = vadd.f32 0.5, %v528_v60  ;;  %v944_v60 = vld [vmem:[%s1257_s10] ss:$0 sm:$0xff] }
 0x143   : > { %v515_v61 = vpop.f32.mrf.mxu1  ;;  %v536_v4 = vmul.f32 %v532_v1, %v511_v51 }
 0x144   : > { %v516_v62 = vadd.f32 %v942_v49, %v515_v61 }
 0x146   : > { %v956_v63 = vpop.eup %955  ;;  %v522_v0 = vmul.f32 0.5, %v516_v62 }
 0x147   : > { %v529_v2 = vmul.f32 0.5, %v956_v63 }
 0x148   : > { %957 = vtanh.f32 %v522_v0 }
 0x149   : > { %v533_v3 = vadd.f32 0.5, %v529_v2 }
 0x14b   : > { %v537_v5 = vmul.f32 %v533_v3, %v513_v57  ;;  %v517_v6 = vpop.f32.mrf.mxu1 }
 0x14c   : > { %v518_v7 = vadd.f32 %v942_v49, %v517_v6 }
 0x14d   : > { %v554_v8 = vpack.c.bf16 %v537_v5, %v536_v4 }
 0x14e   : > { %v523_v9 = vmul.f32 0.5, %v518_v7  ;;  %v958_v10 = vpop.eup %957 }
 0x14f   : > { %854 = vmatmul.msk.bf16.vlgmr.msrb.gmra.mxu2 %vm564_vm4, %v554_v8  ;;  %v530_v11 = vmul.f32 0.5, %v958_v10 }
 0x150   : > { %959 = vtanh.f32 %v523_v9 }
 0x151   : > { %v534_v13 = vadd.f32 0.5, %v530_v11 }
 0x153   : > { %v538_v16 = vmul.f32 %v534_v13, %v516_v62 }
 0x156   : > { %v960_v12 = vpop.eup %959 }
 0x157   : > { %v531_v14 = vmul.f32 0.5, %v960_v12 }
 0x159   : > { %v535_v15 = vadd.f32 0.5, %v531_v14 }
 0x15b   : > { %v539_v17 = vmul.f32 %v535_v15, %v518_v7 }
 0x15d   : > { %v555_v18 = vpack.c.bf16 %v539_v17, %v538_v16 }
 0x15f   : > { %855 = vmatmul.msk.bf16.gmra.mxu2 %vm564_vm4, %v555_v18 }
 0x1d2   : > { %v580_v23 = vpop.f32.mrf.mxu2 }
 0x1d3   : > { %v631_v24 = vadd.f32 %v630_v20, %v580_v23 }
 0x1d5   : > { %v644_v25 = vadd.f32 %v943_v22, %v631_v24 }
 0x1d7   : > { %v648_v27 = vmul.f32 0.5, %v644_v25 }
 0x1d9   : > { %961 = vtanh.f32 %v648_v27 }
 0x1da   : > { %v582_v28 = vpop.f32.mrf.mxu2 }
 0x1db   : > { %v633_v29 = vadd.f32 %v632_v26, %v582_v28 }
 0x1dd   : > { %v645_v30 = vadd.f32 %v943_v22, %v633_v29 }
 0x1df   : > { %v649_v31 = vmul.f32 0.5, %v645_v30  ;;  %v962_v33 = vpop.eup %961 }
 0x1e0   : > { %v656_v36 = vmul.f32 0.5, %v962_v33 }
 0x1e1   : > { %963 = vtanh.f32 %v649_v31 }
 0x1e2   : > { %v585_v34 = vpop.f32.mrf.mxu2  ;;  %v660_v40 = vadd.f32 0.5, %v656_v36 }
 0x1e3   : > { %v636_v35 = vadd.f32 %v635_v32, %v585_v34 }
 0x1e4   : > { %v664_v46 = vmul.f32 %v660_v40, %v644_v25 }
 0x1e5   : > { %v646_v37 = vadd.f32 %v943_v22, %v636_v35 }
 0x1e7   : > { %v964_v38 = vpop.eup %963  ;;  %v650_v39 = vmul.f32 0.5, %v646_v37 }
 0x1e8   : > { %v657_v41 = vmul.f32 0.5, %v964_v38 }
 0x1e9   : > { %965 = vtanh.f32 %v650_v39 }
 0x1ea   : > { %v661_v42 = vadd.f32 0.5, %v657_v41  ;;  %v587_v44 = vpop.f32.mrf.mxu2 }
 0x1eb   : > { %v638_v45 = vadd.f32 %v637_v43, %v587_v44 }
 0x1ec   : > { %v665_v47 = vmul.f32 %v661_v42, %v645_v30 }
 0x1ed   : > { %v647_v48 = vadd.f32 %v943_v22, %v638_v45 }
 0x1ee   : > { %v668_v49 = vpack.c.bf16 %v665_v47, %v664_v46 }
 0x1ef   : > { %v651_v50 = vmul.f32 0.5, %v647_v48  ;;  %v966_v51 = vpop.eup %965 }
 0x1f0   : > { %882 = vmatmul.msk.bf16.vlgmr.msrb.gmra.mxu0 %vm494_vm2, %v668_v49  ;;  %v658_v52 = vmul.f32 0.5, %v966_v51 }
 0x1f1   : > { %967 = vtanh.f32 %v651_v50 }
 0x1f2   : > { %v662_v54 = vadd.f32 0.5, %v658_v52 }
 0x1f4   : > { %v666_v57 = vmul.f32 %v662_v54, %v646_v37 }
 0x1f7   : > { %v968_v53 = vpop.eup %967 }
 0x1f8   : > { %v659_v55 = vmul.f32 0.5, %v968_v53 }
 0x1fa   : > { %v663_v56 = vadd.f32 0.5, %v659_v55 }
 0x1fc   : > { %v667_v58 = vmul.f32 %v663_v56, %v647_v48 }
 0x1fe   : > { %v669_v59 = vpack.c.bf16 %v667_v58, %v666_v57 }
 0x200   : > { %883 = vmatmul.msk.bf16.gmra.mxu0 %vm494_vm2, %v669_v59 }
 0x26d   : > { %v705_v61 = vpop.f32.mrf.mxu0 }
 0x26e   : > { %v706_v62 = vadd.f32 %v944_v60, %v705_v61 }
 0x270   : > { %v715_v63 = vmul.f32 0.5, %v706_v62 }
 0x272   : > { %969 = vtanh.f32 %v715_v63 }
 0x275   : > { %v707_v0 = vpop.f32.mrf.mxu0 }
 0x276   : > { %v708_v1 = vadd.f32 %v944_v60, %v707_v0 }
 0x278   : > { %v970_v2 = vpop.eup %969  ;;  %v716_v3 = vmul.f32 0.5, %v708_v1 }
 0x279   : > { %v723_v4 = vmul.f32 0.5, %v970_v2 }
 0x27a   : > { %971 = vtanh.f32 %v716_v3 }
 0x27b   : > { %v727_v5 = vadd.f32 0.5, %v723_v4 }
 0x27d   : > { %v731_v6 = vmul.f32 %v727_v5, %v706_v62  ;;  %v710_v7 = vpop.f32.mrf.mxu0 }
 0x27e   : > { %v711_v8 = vadd.f32 %v944_v60, %v710_v7 }
 0x27f   : > { %735 = vst [vmem:[%s396_s16] sm:$0xff] %v731_v6 }
 0x280   : > { %v972_v9 = vpop.eup %971  ;;  %v717_v10 = vmul.f32 0.5, %v711_v8 }
 0x281   : > { %v724_v11 = vmul.f32 0.5, %v972_v9 }
 0x282   : > { %973 = vtanh.f32 %v717_v10 }
 0x283   : > { %v728_v12 = vadd.f32 0.5, %v724_v11 }
 0x285   : > { %v732_v13 = vmul.f32 %v728_v12, %v708_v1  ;;  %v712_v14 = vpop.f32.mrf.mxu0 }
 0x286   : > { %v713_v15 = vadd.f32 %v944_v60, %v712_v14 }
 0x287   : > { %736 = vst [vmem:[%s396_s16 + $0x8] sm:$0xff] %v732_v13 }
 0x288   : > { %v974_v16 = vpop.eup %973  ;;  %v718_v17 = vmul.f32 0.5, %v713_v15 }
 0x289   : > { %v725_v18 = vmul.f32 0.5, %v974_v16 }
 0x28a   : > { %975 = vtanh.f32 %v718_v17 }
 0x28b   : > { %v729_v19 = vadd.f32 0.5, %v725_v18 }
 0x28d   : > { %v733_v20 = vmul.f32 %v729_v19, %v711_v8 }
 0x28f   : > { %737 = vst [vmem:[%s396_s16 + $0x10] sm:$0xff] %v733_v20 }
 0x290   : > { %v976_v21 = vpop.eup %975 }
 0x291   : > { %v726_v22 = vmul.f32 0.5, %v976_v21 }
 0x293   : > { %v730_v23 = vadd.f32 0.5, %v726_v22 }
 0x295   : > { %v734_v24 = vmul.f32 %v730_v23, %v713_v15 }
 0x297   : > { %738 = vst [vmem:[%s396_s16 + $0x18] sm:$0xff] %v734_v24 }
 0x298   : > { %1004 = shalt.err (!%p1001_p3)
}
 0x299   : > { %s1041_s14 = smov 128   ;;  %s1042_s16 = smov 8  }
 0x29a   : > { %900 = dma.vmem_to_hbm [thread:$0]  (%p1141_p5), %s753_s3, 512, %s755_s13, %s740_s24, %s1041_s14, %s1041_s14, %s1042_s16  }
 0x29b PF: > { %p906_p4 = scmp.ge.s32.totalorder %s1039_s20, 2  ;;  %s769_s1 = sand.u32 1, %s1027_s17  }
 0x29c   : > { %s770_s2 = scalar_lea.sflag [#allocation3], %s769_s1 }
 0x29d   : > { %p903_p7 = pnand %p906_p4, %p1145_p6 }
 0x29f   : > { %p904_p8 = pneg %p903_p7 }
 0x2a1   : > { %1022 = dma.done.wait (%p904_p8), %s770_s2, 512  }
 0x2a2   : > { %1024 = vsyncadd (%p904_p8), %s770_s2, 4294966784  ;;  %p21_p9 = scmp.ge.s32.totalorder %s1128_s23, 6   ;;  %s1267_s17 = smov %s1031_s18 }
 0x2a3   : > { %s1268_s18 = smov %s1035_s19  ;;  %s1269_s19 = smov %s1139_s26 }
 0x2a4   : > { %s1270_s20 = smov %s1128_s23  ;;  %23 = sbr.rel (!%p21_p9) target bundleno = 7 (0x7), region = 102 }
 0x2a9   :  { %776 = vsyncpa [#allocation3], 1 }
 0x2aa   :  { %778 = vsyncpa [#allocation3 + $0x1], 1 }

</bundles_post_ra>
